<compile_context>
chip_gen: v6e
topology: v6e:2x2x1
jax: 0.10.0
libtpu: 0.0.40
codegen_flags: <defaults>
</compile_context>

<pallas_src>
import functools

import jax
import jax.numpy as jnp
from jax.experimental import pallas as pl
from jax.experimental.pallas import tpu as pltpu


def _round_up(x, m):
    return ((x + m - 1) // m) * m


def _dice_kernel(pred_ref, tgt_ref, out_ref, i_acc, z_acc, y_acc, *,
                 n_classes, tn, n_tiles, tiles_per_split, rem, has_ghost):
    """Grid = (B, n_split, tiles_per_split).

    pred_ref : (1, C, tn) native-dtype logits block (f32 cast happens in VMEM)
    tgt_ref  : (1, 1, tn) native-dtype integer labels block
    out_ref  : (1, 1, C, 3) partial sums: [intersect, sum p^2, label count]
    i/z/y_acc: (C, tn) f32 per-lane accumulators, persist across the innermost
               ("arbitrary") spatial-tile axis.
    """
    h = pl.program_id(1)                       # spatial split (parallel)
    i = pl.program_id(2)                       # tile within this split (arbitrary)
    t = h * tiles_per_split + i                # global spatial tile index

    @pl.when(i == 0)
    def _():
        i_acc[...] = jnp.zeros_like(i_acc)
        z_acc[...] = jnp.zeros_like(z_acc)
        y_acc[...] = jnp.zeros_like(y_acc)

    def accumulate(n_valid):
        logits = pred_ref[0].astype(jnp.float32)               # (C, tn)
        labels = tgt_ref[0].astype(jnp.int32)                  # (1, tn)
        cls = jax.lax.broadcasted_iota(jnp.int32, (n_classes, tn), 0)

        valid = None
        if n_valid is not None:                                # ragged tile only
            col = jax.lax.broadcasted_iota(jnp.int32, (1, tn), 1)
            valid = col < n_valid                              # (1, tn) bool
            # Select BEFORE the softmax so uninitialized VMEM garbage (possibly
            # NaN/Inf) in the ragged tail cannot poison it.
            logits = jnp.where(valid, logits, 0.0)

        # numerically stable softmax over the class (sublane) axis
        m = jnp.max(logits, axis=0, keepdims=True)             # (1, tn)
        e = jnp.exp(logits - m)                                 # EUP
        inv = 1.0 / jnp.sum(e, axis=0, keepdims=True)           # one exact divide/col
        p = e * inv                                             # (C, tn)

        cls_mask = labels == cls                                # (C, tn) bool
        if valid is not None:
            p = jnp.where(valid, p, 0.0)
            cls_mask = jnp.logical_and(cls_mask, valid)

        # one-hot folded through selects (fewer VALU multiplies than p*onehot)
        i_acc[...] += jnp.where(cls_mask, p, 0.0)               # intersect terms
        z_acc[...] += p * p                                     # pred^2 terms
        y_acc[...] += jnp.where(cls_mask, 1.0, 0.0)             # onehot^2 == onehot

    ragged = rem < tn
    if ragged or has_ghost:
        full_limit = n_tiles - 1 if ragged else n_tiles

        @pl.when(t < full_limit)                 # full tiles: zero masking cost
        def _():
            accumulate(None)

        if ragged:
            @pl.when(t == n_tiles - 1)           # the single ragged tile
            def _():
                accumulate(rem)
        # ghost tiles (t >= n_tiles, only when the tile count is odd) do nothing
    else:
        accumulate(None)

    @pl.when(i == tiles_per_split - 1)
    def _():
        out_ref[...] = jnp.concatenate(
            [jnp.sum(i_acc[...], axis=1, keepdims=True),
             jnp.sum(z_acc[...], axis=1, keepdims=True),
             jnp.sum(y_acc[...], axis=1, keepdims=True)],
            axis=1)[None, None]


def dice_loss(pred, target, n_classes, *, tn_max=32768):
    """pred: (B, C, H, W) float logits (f32/bf16); target: (B, H, W) int labels."""
    B, C, H, W = pred.shape
    assert C == n_classes
    HW = H * W

    # --- lane tile selection (large multiple of 128, VMEM-budget capped) -----
    tn = min(tn_max, _round_up(HW, 128))
    c_pad = _round_up(C, 8)              # every (C, tn) buffer is sublane-padded
    bytes_per_col = (
        3 * c_pad * 4                    # three f32 accumulators
        + 2 * (c_pad * 4 + 32)           # double-buffered pred + label blocks
        + 8 * c_pad * 4                  # margin for Mosaic f32 temporaries
    )
    vmem_budget = 16 * 1024 * 1024       # conservative; limit below has 2x+ headroom
    tn = min(tn, max(128, vmem_budget // bytes_per_col // 128 * 128))

    n_tiles = pl.cdiv(HW, tn)
    rem = HW - (n_tiles - 1) * tn        # valid columns in the last real tile

    # --- 2-way spatial "parallel" split: uses both TCs on megacore/v7x even
    #     when B is 1/odd; harmless no-op on single-TC v5e/v6e. ---------------
    n_split = 2 if n_tiles >= 2 else 1
    tiles_per_split = pl.cdiv(n_tiles, n_split)
    has_ghost = n_split * tiles_per_split != n_tiles

    # Free row-major reshapes: no transpose, no upcast, no padding copies.
    pred3 = pred.reshape(B, C, HW)
    tgt3 = target.reshape(B, 1, HW)      # native (possibly narrow) int dtype

    def in_map(b, h, i):
        # Clamp ghost tiles onto the last real tile so the auto-DMA stays in
        # bounds; the kernel skips them via pl.when.
        return (b, 0, jnp.minimum(h * tiles_per_split + i, n_tiles - 1))

    kernel = functools.partial(
        _dice_kernel, n_classes=C, tn=tn, n_tiles=n_tiles,
        tiles_per_split=tiles_per_split, rem=rem, has_ghost=has_ghost)

    parts = pl.pallas_call(
        kernel,
        out_shape=jax.ShapeDtypeStruct((B, n_split, C, 3), jnp.float32),
        grid_spec=pltpu.PrefetchScalarGridSpec(
            num_scalar_prefetch=0,
            grid=(B, n_split, tiles_per_split),
            in_specs=[
                pl.BlockSpec((1, C, tn), in_map),
                pl.BlockSpec((1, 1, tn), in_map),
            ],
            out_specs=pl.BlockSpec((1, 1, C, 3), lambda b, h, i: (b, h, 0, 0)),
            scratch_shapes=[
                pltpu.VMEM((C, tn), jnp.float32),
                pltpu.VMEM((C, tn), jnp.float32),
                pltpu.VMEM((C, tn), jnp.float32),
            ],
        ),
        compiler_params=pltpu.CompilerParams(
            dimension_semantics=("parallel", "parallel", "arbitrary"),
            # > every generation's default scoped limit, < v7x's 64 MiB physical
            vmem_limit_bytes=40 * 1024 * 1024),
    )(pred3, tgt3)

    # Tiny epilogue in plain JAX: combine per-(batch, split) partial sums.
    smooth = 1e-5
    tot = jnp.sum(parts, axis=(0, 1))    # (C, 3)
    dice = 1.0 - (2.0 * tot[:, 0] + smooth) / (tot[:, 1] + tot[:, 2] + smooth)
    return jnp.sum(dice) / n_classes


def dice_loss_ref(pred, target, n_classes):
    """Pure-JAX reference matching the PyTorch module exactly."""
    p = jax.nn.softmax(pred.astype(jnp.float32), axis=1)
    t = jax.nn.one_hot(target, n_classes, dtype=jnp.float32)    # (B,H,W,C)
    t = jnp.transpose(t, (0, 3, 1, 2))                          # (B,C,H,W)
    smooth = 1e-5
    loss = 0.0
    for i in range(n_classes):
        intersect = jnp.sum(p[:, i] * t[:, i])
        y_sum = jnp.sum(t[:, i] * t[:, i])
        z_sum = jnp.sum(p[:, i] * p[:, i])
        loss += 1.0 - (2.0 * intersect + smooth) / (z_sum + y_sum + smooth)
    return loss / n_classes


if __name__ == "__main__":
    key = jax.random.PRNGKey(0)

    # --- main check: shapes implied by the module (B=2, C=4, 16x16), f32 ---
    k1, k2 = jax.random.split(key)
    B, C, H, W = 2, 4, 16, 16
    pred = jax.random.normal(k1, (B, C, H, W), dtype=jnp.float32)
    target = jax.random.randint(k2, (B, H, W), 0, C, dtype=jnp.int32)
    loss = jax.block_until_ready(dice_loss(pred, target, n_classes=C))
    ref = dice_loss_ref(pred, target, n_classes=C)
    assert jnp.allclose(loss, ref, atol=1e-5, rtol=1e-5), (loss, ref)

    # --- spatial split + ragged last tile + ghost tile + non-pow2 class count
    #     (HW=576, tn=256 -> 3 real tiles, 2-way split -> 1 ghost, rem=64) ---
    k3, k4 = jax.random.split(k1)
    B2, C2, H2, W2 = 2, 3, 24, 24
    pred2 = jax.random.normal(k3, (B2, C2, H2, W2), dtype=jnp.float32)
    target2 = jax.random.randint(k4, (B2, H2, W2), 0, C2, dtype=jnp.int32)
    loss2 = jax.block_until_ready(dice_loss(pred2, target2, n_classes=C2, tn_max=256))
    ref2 = dice_loss_ref(pred2, target2, n_classes=C2)
    assert jnp.allclose(loss2, ref2, atol=1e-5, rtol=1e-5), (loss2, ref2)

    # --- even split, no ragged tile; native bf16 logits + int8 labels path
    #     (no wrapper casts; both dtypes converted on the VMEM block) ---
    k5, k6 = jax.random.split(k3)
    B3, C3, H3, W3 = 2, 4, 32, 32
    pred3 = jax.random.normal(k5, (B3, C3, H3, W3), dtype=jnp.float32).astype(jnp.bfloat16)
    target3 = jax.random.randint(k6, (B3, H3, W3), 0, C3, dtype=jnp.int32).astype(jnp.int8)
    loss3 = jax.block_until_ready(dice_loss(pred3, target3, n_classes=C3, tn_max=256))
    ref3 = dice_loss_ref(pred3, target3, n_classes=C3)
    assert jnp.allclose(loss3, ref3, atol=1e-5, rtol=1e-5), (loss3, ref3)

    print("KERNEL_OK")
</pallas_src>

<mosaic_0001>
module attributes {stable_mosaic.version = 11 : i64} {
  func.func @_dice_kernel(%arg0: i32, %arg1: i32, %arg2: i32, %arg3: memref<1x4x256xf32, #tpu.memory_space<vmem>>, %arg4: memref<1x1x256xi32, #tpu.memory_space<vmem>>, %arg5: memref<1x1x4x3xf32, #tpu.memory_space<vmem>>, %arg6: memref<4x256xf32, #tpu.memory_space<vmem>>, %arg7: memref<4x256xf32, #tpu.memory_space<vmem>>, %arg8: memref<4x256xf32, #tpu.memory_space<vmem>>) attributes {dimension_semantics = [#tpu.dimension_semantics<parallel>, #tpu.dimension_semantics<parallel>, #tpu.dimension_semantics<arbitrary>], iteration_bounds = array<i64: 2, 1, 1>, scalar_prefetch = 0 : i64, scratch_operands = 3 : i64, tpu.core_type = #tpu.core_type<tc>, window_params = [{transform_indices = @transform_0, window_bounds = array<i64: 1, 4, 256>}, {transform_indices = @transform_1, window_bounds = array<i64: 1, 1, 256>}, {transform_indices = @transform_2, window_bounds = array<i64: 1, 1, 4, 3>}]} {
    %c0_i32 = arith.constant 0 : i32
    %0 = arith.cmpi eq, %arg2, %c0_i32 : i32
    %1 = arith.extui %0 : i1 to i32
    %c0_i32_0 = arith.constant 0 : i32
    %2 = arith.cmpi ne, %1, %c0_i32_0 : i32
    scf.if %2 {
      %cst_25 = arith.constant 0.000000e+00 : f32
      %39 = vector.broadcast %cst_25 : f32 to vector<4x256xf32>
      %c0_26 = arith.constant 0 : index
      %c0_27 = arith.constant 0 : index
      %40 = vector.load %arg6[%c0_26, %c0_27] : memref<4x256xf32, #tpu.memory_space<vmem>>, vector<4x256xf32>
      tpu.vector_store %arg6[%c0_26, %c0_27], %39 {strides = array<i32>} : memref<4x256xf32, #tpu.memory_space<vmem>>, vector<4x256xf32>,
      %cst_28 = arith.constant 0.000000e+00 : f32
      %41 = vector.broadcast %cst_28 : f32 to vector<4x256xf32>
      %c0_29 = arith.constant 0 : index
      %c0_30 = arith.constant 0 : index
      %42 = vector.load %arg7[%c0_29, %c0_30] : memref<4x256xf32, #tpu.memory_space<vmem>>, vector<4x256xf32>
      tpu.vector_store %arg7[%c0_29, %c0_30], %41 {strides = array<i32>} : memref<4x256xf32, #tpu.memory_space<vmem>>, vector<4x256xf32>,
      %cst_31 = arith.constant 0.000000e+00 : f32
      %43 = vector.broadcast %cst_31 : f32 to vector<4x256xf32>
      %c0_32 = arith.constant 0 : index
      %c0_33 = arith.constant 0 : index
      %44 = vector.load %arg8[%c0_32, %c0_33] : memref<4x256xf32, #tpu.memory_space<vmem>>, vector<4x256xf32>
      tpu.vector_store %arg8[%c0_32, %c0_33], %43 {strides = array<i32>} : memref<4x256xf32, #tpu.memory_space<vmem>>, vector<4x256xf32>,
    } else {
    }
    %c0 = arith.constant 0 : index
    %c0_1 = arith.constant 0 : index
    %c0_2 = arith.constant 0 : index
    %3 = vector.load %arg3[%c0, %c0_1, %c0_2] : memref<1x4x256xf32, #tpu.memory_space<vmem>>, vector<1x4x256xf32>
    %4 = vector.shape_cast %3 : vector<1x4x256xf32> to vector<4x256xf32>
    %c0_3 = arith.constant 0 : index
    %c0_4 = arith.constant 0 : index
    %c0_5 = arith.constant 0 : index
    %5 = vector.load %arg4[%c0_3, %c0_4, %c0_5] : memref<1x1x256xi32, #tpu.memory_space<vmem>>, vector<1x1x256xi32>
    %6 = vector.shape_cast %5 : vector<1x1x256xi32> to vector<1x256xi32>
    %7 = tpu.iota {dimensions = array<i32: 0>} : vector<4x256xi32>
    %cst = arith.constant dense<0xFF800000> : vector<256xf32>
    %8 = vector.multi_reduction <maximumf>, %4, %cst [0] : vector<4x256xf32> to vector<256xf32>
    %9 = vector.shape_cast %8 : vector<256xf32> to vector<1x256xf32>
    %10 = vector.broadcast %9 : vector<1x256xf32> to vector<4x256xf32>
    %11 = arith.subf %4, %10 : vector<4x256xf32>
    %12 = math.exp %11 : vector<4x256xf32>
    %cst_6 = arith.constant dense<0.000000e+00> : vector<256xf32>
    %13 = vector.multi_reduction <add>, %12, %cst_6 [0] : vector<4x256xf32> to vector<256xf32>
    %14 = vector.shape_cast %13 : vector<256xf32> to vector<1x256xf32>
    %cst_7 = arith.constant 1.000000e+00 : f32
    %15 = vector.broadcast %cst_7 : f32 to vector<1x256xf32>
    %16 = arith.divf %15, %14 : vector<1x256xf32>
    %17 = vector.broadcast %16 : vector<1x256xf32> to vector<4x256xf32>
    %18 = arith.mulf %12, %17 : vector<4x256xf32>
    %19 = vector.broadcast %6 : vector<1x256xi32> to vector<4x256xi32>
    %20 = arith.cmpi eq, %19, %7 : vector<4x256xi32>
    %c0_8 = arith.constant 0 : index
    %c0_9 = arith.constant 0 : index
    %21 = vector.load %arg6[%c0_8, %c0_9] : memref<4x256xf32, #tpu.memory_space<vmem>>, vector<4x256xf32>
    %cst_10 = arith.constant 0.000000e+00 : f32
    %22 = vector.broadcast %cst_10 : f32 to vector<4x256xf32>
    %23 = arith.select %20, %18, %22 : vector<4x256xi1>, vector<4x256xf32>
    %24 = arith.addf %21, %23 : vector<4x256xf32>
    %c0_11 = arith.constant 0 : index
    %c0_12 = arith.constant 0 : index
    %25 = vector.load %arg6[%c0_11, %c0_12] : memref<4x256xf32, #tpu.memory_space<vmem>>, vector<4x256xf32>
    tpu.vector_store %arg6[%c0_11, %c0_12], %24 {strides = array<i32>} : memref<4x256xf32, #tpu.memory_space<vmem>>, vector<4x256xf32>,
    %c0_13 = arith.constant 0 : index
    %c0_14 = arith.constant 0 : index
    %26 = vector.load %arg7[%c0_13, %c0_14] : memref<4x256xf32, #tpu.memory_space<vmem>>, vector<4x256xf32>
    %27 = arith.mulf %18, %18 : vector<4x256xf32>
    %28 = arith.addf %26, %27 : vector<4x256xf32>
    %c0_15 = arith.constant 0 : index
    %c0_16 = arith.constant 0 : index
    %29 = vector.load %arg7[%c0_15, %c0_16] : memref<4x256xf32, #tpu.memory_space<vmem>>, vector<4x256xf32>
    tpu.vector_store %arg7[%c0_15, %c0_16], %28 {strides = array<i32>} : memref<4x256xf32, #tpu.memory_space<vmem>>, vector<4x256xf32>,
    %c0_17 = arith.constant 0 : index
    %c0_18 = arith.constant 0 : index
    %30 = vector.load %arg8[%c0_17, %c0_18] : memref<4x256xf32, #tpu.memory_space<vmem>>, vector<4x256xf32>
    %cst_19 = arith.constant 1.000000e+00 : f32
    %cst_20 = arith.constant 0.000000e+00 : f32
    %31 = vector.broadcast %cst_19 : f32 to vector<4x256xf32>
    %32 = vector.broadcast %cst_20 : f32 to vector<4x256xf32>
    %33 = arith.select %20, %31, %32 : vector<4x256xi1>, vector<4x256xf32>
    %34 = arith.addf %30, %33 : vector<4x256xf32>
    %c0_21 = arith.constant 0 : index
    %c0_22 = arith.constant 0 : index
    %35 = vector.load %arg8[%c0_21, %c0_22] : memref<4x256xf32, #tpu.memory_space<vmem>>, vector<4x256xf32>
    tpu.vector_store %arg8[%c0_21, %c0_22], %34 {strides = array<i32>} : memref<4x256xf32, #tpu.memory_space<vmem>>, vector<4x256xf32>,
    %c0_i32_23 = arith.constant 0 : i32
    %36 = arith.cmpi eq, %arg2, %c0_i32_23 : i32
    %37 = arith.extui %36 : i1 to i32
    %c0_i32_24 = arith.constant 0 : i32
    %38 = arith.cmpi ne, %37, %c0_i32_24 : i32
    scf.if %38 {
      %c0_25 = arith.constant 0 : index
      %c0_26 = arith.constant 0 : index
      %39 = vector.load %arg6[%c0_25, %c0_26] : memref<4x256xf32, #tpu.memory_space<vmem>>, vector<4x256xf32>
      %cst_27 = arith.constant dense<0.000000e+00> : vector<4xf32>
      %40 = vector.multi_reduction <add>, %39, %cst_27 [1] : vector<4x256xf32> to vector<4xf32>
      %41 = vector.shape_cast %40 : vector<4xf32> to vector<4x1xf32>
      %c0_28 = arith.constant 0 : index
      %c0_29 = arith.constant 0 : index
      %42 = vector.load %arg7[%c0_28, %c0_29] : memref<4x256xf32, #tpu.memory_space<vmem>>, vector<4x256xf32>
      %cst_30 = arith.constant dense<0.000000e+00> : vector<4xf32>
      %43 = vector.multi_reduction <add>, %42, %cst_30 [1] : vector<4x256xf32> to vector<4xf32>
      %44 = vector.shape_cast %43 : vector<4xf32> to vector<4x1xf32>
      %c0_31 = arith.constant 0 : index
      %c0_32 = arith.constant 0 : index
      %45 = vector.load %arg8[%c0_31, %c0_32] : memref<4x256xf32, #tpu.memory_space<vmem>>, vector<4x256xf32>
      %cst_33 = arith.constant dense<0.000000e+00> : vector<4xf32>
      %46 = vector.multi_reduction <add>, %45, %cst_33 [1] : vector<4x256xf32> to vector<4xf32>
      %47 = vector.shape_cast %46 : vector<4xf32> to vector<4x1xf32>
      %48 = tpu.concatenate %41, %44, %47 in 1 : vector<4x1xf32>, vector<4x1xf32>, vector<4x1xf32> -> vector<4x3xf32>
      %49 = vector.shape_cast %48 : vector<4x3xf32> to vector<1x1x4x3xf32>
      %c0_34 = arith.constant 0 : index
      %c0_35 = arith.constant 0 : index
      %c0_36 = arith.constant 0 : index
      %c0_37 = arith.constant 0 : index
      %50 = vector.load %arg5[%c0_34, %c0_35, %c0_36, %c0_37] : memref<1x1x4x3xf32, #tpu.memory_space<vmem>>, vector<1x1x4x3xf32>
      tpu.vector_store %arg5[%c0_34, %c0_35, %c0_36, %c0_37], %49 {strides = array<i32>} : memref<1x1x4x3xf32, #tpu.memory_space<vmem>>, vector<1x1x4x3xf32>,
    } else {
    }
    return
  }
  func.func @transform_0(%arg0: i32, %arg1: i32, %arg2: i32) -> (i32, i32, i32) {
    %c1_i32 = arith.constant 1 : i32
    %0 = arith.muli %arg1, %c1_i32 : i32
    %1 = arith.addi %0, %arg2 : i32
    %c0_i32 = arith.constant 0 : i32
    %2 = arith.minsi %1, %c0_i32 : i32
    %c0_i32_0 = arith.constant 0 : i32
    %c0_i32_1 = arith.constant 0 : i32
    return %arg0, %c0_i32_0, %2 : i32, i32, i32
  }
  func.func @transform_1(%arg0: i32, %arg1: i32, %arg2: i32) -> (i32, i32, i32) {
    %c1_i32 = arith.constant 1 : i32
    %0 = arith.muli %arg1, %c1_i32 : i32
    %1 = arith.addi %0, %arg2 : i32
    %c0_i32 = arith.constant 0 : i32
    %2 = arith.minsi %1, %c0_i32 : i32
    %c0_i32_0 = arith.constant 0 : i32
    %c0_i32_1 = arith.constant 0 : i32
    return %arg0, %c0_i32_0, %2 : i32, i32, i32
  }
  func.func @transform_2(%arg0: i32, %arg1: i32, %arg2: i32) -> (i32, i32, i32, i32) {
    %c0_i32 = arith.constant 0 : i32
    %c0_i32_0 = arith.constant 0 : i32
    %c0_i32_1 = arith.constant 0 : i32
    return %arg0, %arg1, %c0_i32, %c0_i32_0 : i32, i32, i32, i32
  }
}

</mosaic_0001>

<bundles_post_ra>
// kernel: tpu_custom_call.1
= control target key start
LH: loop header
LB: loop body
LE: loop exit
PB: predicated region body
PF: predicated region fallthrough
CT: control target
= control target key end

     0   :  { %7 = vsyncpa [#allocation6], 0  ;;  %s877_s0 = inlined_call_operand.hbm [shape: f32[2,4,256], index: 0, kind: input, shape index: {}]   ;;  %s878_s1 = inlined_call_operand.hbm [shape: s32[2,1,256], index: 1, kind: input, shape index: {}]   ;;  %s879_s2 = inlined_call_operand.vmem [shape: f32[2,1,4,3], index: 2, kind: output, shape index: {}]  }
   0x1   :  { %9 = vsyncpa [#allocation6 + $0x1], 0 }
   0x2   :  { %10 = vsyncpa [#allocation8], 0 }
   0x3   :  { %12 = vsyncpa [#allocation8 + $0x1], 0  ;;  %s725_s9 = smov 0   ;;  %s727_s10 = smov 0  }
   0x4   :  { %s729_s11 = smov 0   ;;  %s731_s12 = smov 0  }
   0x5   :  { %s733_s13 = smov 0   ;;  %s735_s14 = smov 0  }
   0x6 LB: > { %s507_s15 = sadd.s32 4294967295, %s705_s14   ;;  %s37_s16 = sadd.s32 1, %s701_s13  ;;  %s705_s14 = sphi %s735_s14, %s18_s14   ;;  %s701_s13 = sphi %s733_s13, %s888_s13   ;;  %s697_s12 = sphi %s731_s12, %s887_s12   ;;  %s693_s11 = sphi %s729_s11, %s886_s11   ;;  %s689_s10 = sphi %s727_s10, %s885_s10   ;;  %s685_s9 = sphi %s725_s9, %s884_s9  }
   0x7   : > { %p39_p0 = scmp.ge.s32.totalorder %s37_s16, 2  ;;  %s52_s17 = sadd.s32 1, %s693_s11 }
   0x8   : > { %p59_p1 = scmp.ne.s32.totalorder %s693_s11, %s689_s10  ;;  %p60_p2 = scmp.eq.s32.totalorder %s705_s14, 0 }
   0x9   : > { %s890_s16 = smov (%p39_p0, %s37_s16), 0  ;;  %p65_p4 = scmp.ne.s32.totalorder %s689_s10, %s685_s9 }
   0xa   : > { %p761_p3 = por %p60_p2, %p59_p1  ;;  %s47_s19 = ssub.s32 %s701_s13, %s890_s16 }
   0xb   : > { %p66_p5 = scmp.eq.s32.totalorder %s507_s15, 0  ;;  %p50_p6 = scmp.eq.s32.totalorder %s47_s19, 0 }
   0xc   : > { %p538_p8 = scmp.lt.s32.totalorder %s705_s14, 2  ;;  %s777_s22 = sand.u32 1, %s693_s11  }
   0xd   : > { %p768_p7 = por %p66_p5, %p65_p4  ;;  %s523_s23 = sshll.u32 %s701_s13, 7 }
   0xe   : > { %s774_s21 = scalar_select %p50_p6, %s693_s11, %s52_s17  }
   0xf   : > { %s511_s24 = sshll.u32 %s777_s22, 3  ;;  %s166_s27 = scalar_lea.hbm %s877_s0, %s523_s23 }
  0x10   : > { %s155_s28 = scalar_lea.vmem [#allocation5], %s511_s24  ;;  %p786_p9 = pnand %p538_p8, %p761_p3 }
  0x11   : > { %s168_s29 = sshll.u32 %s155_s28, 4  ;;  %p517_p10 = scmp.ge.s32.totalorder %s705_s14, 1  ;;  %s169_s29 = int_to_ptr.vmem [resolvable:$true] %s168_s29 }
  0x12   : > { %p197_p11 = scmp.lt.s32.totalorder %s705_s14, 3  ;;  %s152_s3 = scalar_lea.sflag [#allocation6], %s777_s22 }
  0x13   : > { %p597_p12 = pneg %p786_p9  ;;  %s608_s4 = scalar_lea.vmem %s169_s29, 128 }
  0x14   : > { %p609_p13 = scmp.ne.s32.totalorder %s169_s29, %s608_s4  ;;  %s707_s5 = smov [#allocation5]  }
  0x15   : > { %s613_s6 = sshll.u32 %s707_s5, 4  ;;  %s614_s6 = int_to_ptr.vmem [resolvable:$false] %s613_s6 }
  0x16   : > { %p611_p0 = pnand %p609_p13, %p597_p12  ;;  %s615_s7 = scalar_lea.vmem %s614_s6, 256 }
  0x17   : > { %p616_p2 = scmp.lt.s32.totalorder %s169_s29, %s614_s6  ;;  %p617_p3 = scmp.lt.s32.totalorder %s615_s7, %s608_s4 }
  0x18   : > { %p612_p1 = pneg %p611_p0 }
  0x19   : > { %p618_p4 = por %p617_p3, %p616_p2 }
  0x1b   : > { %p619_p5 = pnand %p618_p4, %p612_p1 }
  0x1d   : > { %622 = shalt.err (!%p619_p5)
}
  0x1e   : > { %534 = dma.hbm_to_vmem [thread:$0]  (!%p786_p9), %s166_s27, 128, %s169_s29, %s152_s3  }
  0x1f   : > { %p804_p6 = pnand %p517_p10, %p197_p11  ;;  %s514_s9 = sshll.u32 %s777_s22, 1 }
  0x20   : > { %s524_s15 = sshll.u32 %s701_s13, 5  ;;  %s179_s23 = scalar_lea.vmem [#allocation7], %s514_s9 }
  0x21   : > { %s190_s19 = scalar_lea.hbm %s878_s1, %s524_s15  ;;  %s192_s24 = sshll.u32 %s179_s23, 4  ;;  %s193_s24 = int_to_ptr.vmem [resolvable:$true] %s192_s24 }
  0x22   : > { %s176_s25 = scalar_lea.sflag [#allocation8], %s777_s22  ;;  %s636_s26 = scalar_lea.vmem %s193_s24, 32 }
  0x23   : > { %p637_p8 = scmp.ne.s32.totalorder %s193_s24, %s636_s26  ;;  %s708_s27 = smov [#allocation7]  }
  0x24   : > { %s641_s28 = sshll.u32 %s708_s27, 4  ;;  %s642_s28 = int_to_ptr.vmem [resolvable:$false] %s641_s28 }
  0x25   : > { %p639_p13 = pnand %p637_p8, %p597_p12  ;;  %s643_s29 = scalar_lea.vmem %s642_s28, 64 }
  0x26   : > { %p644_p10 = scmp.lt.s32.totalorder %s193_s24, %s642_s28  ;;  %p645_p11 = scmp.lt.s32.totalorder %s643_s29, %s636_s26 }
  0x27   : > { %p640_p0 = pneg %p639_p13 }
  0x28   : > { %p646_p1 = por %p645_p11, %p644_p10 }
  0x2a   : > { %p647_p2 = pnand %p646_p1, %p640_p0 }
  0x2c   : > { %650 = shalt.err (!%p647_p2)
}
  0x2d   : > { %537 = dma.hbm_to_vmem [thread:$0]  (!%p786_p9), %s190_s19, 32, %s193_s24, %s176_s25  }
  0x2e   : > { %201 = sbr.rel (%p804_p6) target bundleno = 277 (0x115), region = 28  ;;  %s203_s22 = sand.u32 (!%p804_p6), 1, %s689_s10  }
  0x2f   : > { %s518_s3 = sshll.u32 (!%p804_p6), %s203_s22, 3  ;;  %s204_s4 = scalar_lea.sflag (!%p804_p6), [#allocation6], %s203_s22 }
  0x30   : > { %s207_s5 = scalar_lea.vmem (!%p804_p6), [#allocation5], %s518_s3 }
  0x33   : > { %676 = dma.done.wait (%p768_p7), %s204_s4, 128  }
  0x34   : > { %678 = vsyncadd (%p768_p7), %s204_s4, 4294967168  ;;  %s519_s6 = sshll.u32 %s203_s22, 1  ;;  %s213_s7 = scalar_lea.sflag [#allocation8], %s203_s22 }
  0x35   : > { %s216_s9 = scalar_lea.vmem [#allocation7], %s519_s6 }
  0x36   : > { %680 = dma.done.wait (%p768_p7), %s213_s7, 32  }
  0x37   : > { %682 = vsyncadd (%p768_p7), %s213_s7, 4294967264  ;;  %v268_v0 = vlaneseq  ;;  %vm273_vm0 = vcmask 1043456   ;;  %v266_v4 = vld [vmem:[%s207_s5] sm:$0xff]  ;;  %v267_v5 = vld [vmem:[%s216_s9] sm:$0x3]  ;;  %v709_v14 = vmov 0.0  }
  0x38   : > { %v271_v6 = vcombine.high %v266_v4, %v266_v4  ;;  %v274_v7 = vsel %vm273_vm0, %v266_v4, -inf  ;;  %p252_p7 = scmp.lt.s32.totalorder %s697_s12, 1  ;;  %vm386_vm3 = vcmask 7168   ;;  %vm388_vm4 = vcmask 15360  }
  0x39   : > { %v830_v1 = vshrl.u32 %v268_v0, 7  ;;  %v275_v10 = vrot.slane %v274_v7, 4  ;;  %vm390_vm5 = vcmask 19456  }
  0x3a   : > { %v281_v11 = vsel %vm273_vm0, %v271_v6, -inf  ;;  %s892_s12 = smov (!%p252_p7, %s697_s12), 1 }
  0x3b   : > { %v323_v2 = vsub.s32 0, %v830_v1  ;;  %v327_v3 = vsub.s32 1, %v830_v1  ;;  %v276_v12 = vmax.f32 %v274_v7, %v275_v10  ;;  %v282_v13 = vrot.slane %v281_v11, 4  ;;  %s520_s20 = sshll.u32 %s892_s12, 2 }
  0x3c   : > { %s258_s15 = scalar_lea.vmem %s879_s2, %s520_s20 }
  0x3d   : > { %v324_v8 = vrot.slane %v267_v5, %v323_v2  ;;  %v328_v9 = vrot.slane %v267_v5, %v327_v3  ;;  %v277_v19 = vrot.slane %v276_v12, 2  ;;  %v283_v20 = vmax.f32 %v281_v11, %v282_v13 }
  0x3f   : > { %vm329_vm1 = vcmp.eq.s32.totalorder %v324_v8, %v830_v1  ;;  %vm330_vm2 = vcmp.eq.s32.totalorder %v328_v9, %v830_v1  ;;  %v278_v23 = vmax.f32 %v276_v12, %v277_v19  ;;  %v284_v24 = vrot.slane %v283_v20, 2 }
  0x40   : > { %v348_v15 = vsel %vm329_vm1, 1.0, %v709_v14  ;;  %v349_v16 = vsel %vm330_vm2, 1.0, %v709_v14 }
  0x41   : > { %v352_v17 = vcombine.low %v348_v15, %v349_v16  ;;  %v526_v18 = vcombine.low %v349_v16, %v349_v16  ;;  %v279_v26 = vrot.slane %v278_v23, 1  ;;  %v285_v27 = vmax.f32 %v283_v20, %v284_v24 }
  0x43   : > { %v381_v21 = vsel %vm273_vm0, %v352_v17, 0.0  ;;  %v382_v22 = vsel %vm273_vm0, %v526_v18, 0.0  ;;  %v280_v28 = vmax.f32 %v278_v23, %v279_v26  ;;  %v286_v29 = vrot.slane %v285_v27, 1 }
  0x44   : > { %v383_v25 = vadd.f32 %v382_v22, %v381_v21 }
  0x45   : > { %v287_v30 = vmax.f32 %v285_v27, %v286_v29 }
  0x46   : > { %384 = vadd.xlane.f32.xlu1 %v383_v25 }
  0x47   : > { %v290_v31 = vcombine.low %v280_v28, %v287_v30 }
  0x49   : > { %v292_v32 = vsub.f32 %v266_v4, %v290_v31 }
  0x4b   : > { %v293_v33 = vmul.f32 1.442695, %v292_v32 }
  0x4d   : > { %589 = vpow2.f32 %v293_v33 }
  0x5a   : > { %v590_v34 = vpop.eup %589 }
  0x5b   : > { %v296_v35 = vcombine.high %v590_v34, %v590_v34  ;;  %v298_v36 = vsel %vm273_vm0, %v590_v34, 0.0 }
  0x5c   : > { %v299_v37 = vrot.slane %v298_v36, 4 }
  0x5d   : > { %v305_v38 = vsel %vm273_vm0, %v296_v35, 0.0 }
  0x5e   : > { %v300_v39 = vadd.f32 %v299_v37, %v298_v36  ;;  %v306_v40 = vrot.slane %v305_v38, 4 }
  0x60   : > { %v301_v41 = vrot.slane %v300_v39, 2  ;;  %v307_v42 = vadd.f32 %v306_v40, %v305_v38 }
  0x62   : > { %v302_v43 = vadd.f32 %v301_v41, %v300_v39  ;;  %v308_v44 = vrot.slane %v307_v42, 2 }
  0x64   : > { %v303_v45 = vrot.slane %v302_v43, 1  ;;  %v309_v46 = vadd.f32 %v308_v44, %v307_v42 }
  0x66   : > { %v304_v47 = vadd.f32 %v303_v45, %v302_v43  ;;  %v310_v48 = vrot.slane %v309_v46, 1 }
  0x68   : > { %v311_v49 = vadd.f32 %v310_v48, %v309_v46  ;;  %591 = vrcp.f32 %v304_v47 }
  0x6a   : > { %593 = vrcp.f32 %v311_v49 }
  0x75   : > { %v592_v50 = vpop.eup %591 }
  0x77   : > { %v594_v51 = vpop.eup %593 }
  0x78   : > { %v318_v52 = vcombine.low %v592_v50, %v594_v51 }
  0x7a   : > { %v320_v53 = vmul.f32 %v590_v34, %v318_v52 }
  0x7c   : > { %v333_v54 = vcombine.high %v320_v53, %v320_v53  ;;  %v335_v55 = vsel %vm329_vm1, %v320_v53, 0.0  ;;  %v344_v56 = vmul.f32 %v320_v53, %v320_v53 }
  0x7e   : > { %v336_v57 = vsel %vm330_vm2, %v333_v54, 0.0  ;;  %v370_v58 = vcombine.high %v344_v56, %v344_v56  ;;  %v372_v63 = vsel %vm273_vm0, %v344_v56, 0.0 }
  0x7f   : > { %v339_v59 = vcombine.low %v335_v55, %v336_v57  ;;  %v525_v60 = vcombine.low %v336_v57, %v336_v57 }
  0x80   : > { %v373_v0 = vsel %vm273_vm0, %v370_v58, 0.0 }
  0x81   : > { %v363_v61 = vsel %vm273_vm0, %v339_v59, 0.0  ;;  %v364_v62 = vsel %vm273_vm0, %v525_v60, 0.0  ;;  %v374_v3 = vadd.f32 %v373_v0, %v372_v63 }
  0x82   : > { %v365_v2 = vadd.f32 %v364_v62, %v363_v61 }
  0x84   : > { %366 = vadd.xlane.f32.xlu0 %v365_v2 }
  0x88   : > { %375 = vadd.xlane.f32.xlu0 %v374_v3 }
  0xcf   : > { %v385_v1 = vpop.xlane.xlu1 %384 }
 0x10d   : > { %v367_v4 = vpop.xlane.xlu0 %366 }
 0x111   : > { %v376_v5 = vpop.xlane.xlu0 %375 }
 0x112   : > { %v387_v6 = vsel %vm386_vm3, %v367_v4, %v376_v5 }
 0x113   : > { %v389_v7 = vsel %vm388_vm4, %v387_v6, %v385_v1 }
 0x114   : > { %391 = vst.msk [vmem:[%s258_s15] sm:$0xf] %vm390_vm5, %v389_v7 }
 0x115 PF: > { %s18_s14 = sadd.s32 1, %s705_s14   ;;  %s884_s9 = smov %s689_s10 }
 0x116   : > { %p15_p9 = scmp.ge.s32.totalorder %s18_s14, 4   ;;  %s885_s10 = smov %s693_s11 }
 0x117   : > { %s886_s11 = smov %s774_s21  ;;  %s887_s12 = smov %s701_s13 }
 0x118   : > { %s888_s13 = smov %s890_s16  ;;  %17 = sbr.rel (!%p15_p9) target bundleno = 6 (0x6), region = 89 }
 0x11d   :  { %417 = vsyncpa [#allocation6], 1 }
 0x11e   :  { %419 = vsyncpa [#allocation6 + $0x1], 1 }
 0x11f   :  { %420 = vsyncpa [#allocation8], 1 }
 0x120   :  { %422 = vsyncpa [#allocation8 + $0x1], 1 }

</bundles_post_ra>
